<compile_context>
chip_gen: v5e
topology: v5e:2x2
jax: 0.10.0
libtpu: 0.0.40
codegen_flags: <defaults>
</compile_context>

<pallas_src>
import jax
import jax.numpy as jnp
from jax import lax
from jax.experimental import pallas as pl
from jax.experimental.pallas import tpu as pltpu

LN_EPS = 1e-5  # PyTorch nn.LayerNorm default


def _merge_ln_reduce_kernel(top_ref, bot_ref, wt_ref, wb_ref, s_ref, b_ref, o_ref):
    """Fused 2x2 patch-merge + LayerNorm(4C) + bias-free Linear(4C -> 2C).

    top_ref / bot_ref hold the even-row / odd-row halves of each merged token
    with channel order [x0 | x2] and [x1 | x3] (the weights were permuted to
    match in prepare_patch_merging_params).  Refs may be 2D (tm, 2C) or 3D
    (rows, W/2, 2C); tokens are flattened to rows either way.

    gamma is pre-folded into the weights, beta into the output bias, so:
        y = inv_std * (x @ Wg) - (mean * inv_std) * colsum(Wg) + beta @ W^T
    """
    two_c = wt_ref.shape[-1]
    top = top_ref[...].reshape(-1, two_c)
    bot = bot_ref[...].reshape(-1, two_c)

    # MXU: raw activations in the weight dtype, f32 accumulation.
    w_t = wt_ref[...]
    w_b = wb_ref[...]
    acc = (jnp.dot(top.astype(w_t.dtype), w_t, preferred_element_type=jnp.float32)
           + jnp.dot(bot.astype(w_b.dtype), w_b, preferred_element_type=jnp.float32))

    # One-pass LayerNorm statistics over the full 4C channel group (f32).
    top32 = top.astype(jnp.float32)
    bot32 = bot.astype(jnp.float32)
    inv_n = 1.0 / (2 * two_c)
    s1 = (jnp.sum(top32, axis=-1, keepdims=True)
          + jnp.sum(bot32, axis=-1, keepdims=True))
    s2 = (jnp.sum(top32 * top32, axis=-1, keepdims=True)
          + jnp.sum(bot32 * bot32, axis=-1, keepdims=True))
    mean = s1 * inv_n
    var = s2 * inv_n - mean * mean
    inv_std = lax.rsqrt(var + LN_EPS)          # EUP slot, off the VALU path

    y = acc * inv_std - (mean * inv_std) * s_ref[...] + b_ref[...]
    o_ref[...] = y.reshape(o_ref.shape).astype(o_ref.dtype)


def prepare_patch_merging_params(gamma, beta, w_reduction, *, weight_dtype=None):
    """Fold LN affine into the reduction weight and permute to kernel layout.

    Call once at parameter-load time.
      gamma, beta : (4C,) LayerNorm affine params (channel order [x0|x1|x2|x3]).
      w_reduction : (2C, 4C) PyTorch Linear weight (bias-free).
    Returns (wg_top, wg_bot, col_sum, bias):
      wg_top/wg_bot : (2C, 2C) gamma-scaled W^T rows for [x0|x2] / [x1|x3].
      col_sum       : (1, 2C) f32 column sums of the gamma-scaled weight.
      bias          : (1, 2C) f32 = beta @ W^T.
    """
    four_c = gamma.shape[0]
    C = four_c // 4
    wt = jnp.transpose(w_reduction).astype(jnp.float32)        # (4C, 2C)
    wg = wt * gamma.astype(jnp.float32)[:, None]                # fold gamma

    def top_half(m):   # rows of x0 then x2  (even input rows)
        return jnp.concatenate([m[0 * C:1 * C], m[2 * C:3 * C]], axis=0)

    def bot_half(m):   # rows of x1 then x3  (odd input rows)
        return jnp.concatenate([m[1 * C:2 * C], m[3 * C:4 * C]], axis=0)

    wg_top = top_half(wg)
    wg_bot = bot_half(wg)
    if weight_dtype is not None:
        wg_top = wg_top.astype(weight_dtype)
        wg_bot = wg_bot.astype(weight_dtype)
    # Column sums are taken from the weights the MXU will actually see.
    col_sum = (jnp.sum(wg_top.astype(jnp.float32), axis=0, keepdims=True)
               + jnp.sum(wg_bot.astype(jnp.float32), axis=0, keepdims=True))
    bias = (beta.astype(jnp.float32) @ wt).reshape(1, 2 * C)
    return (wg_top, wg_bot, col_sum, bias)


def _pick_rows_per_block(n_rows, tokens_per_row, two_c, x_bytes, out_bytes,
                         max_tokens, budget_bytes):
    """Largest leading-dim block fitting the (double-buffered) VMEM budget."""
    # Per token: double-buffered inputs (top+bot) and output, plus ~3 transient
    # f32 token-width buffers inside the kernel (stats / f32 accumulator).
    per_token = two_c * (4 * x_bytes + 2 * out_bytes + 12)
    per_row = max(1, tokens_per_row * per_token)
    rows = max(1, budget_bytes // per_row)
    rows = min(rows, max(1, max_tokens // tokens_per_row))
    rows = min(rows, n_rows)
    if n_rows >= 2:
        # Keep >= 2 grid steps so the "parallel" axis can be sharded across
        # both TensorCores on megacore (v7x-style) parts.
        rows = min(rows, pl.cdiv(n_rows, 2))
    return max(1, rows)


def patch_merging_forward(x, input_resolution, params, *,
                          max_tokens_per_block=2048,
                          block_vmem_budget_bytes=12 * 1024 * 1024):
    """PatchMerging forward: 2x2 merge -> LayerNorm(4C) -> Linear(4C, 2C).

    x: (B, H*W, C); params from prepare_patch_merging_params.
    Returns (B, H/2 * W/2, 2C) in x.dtype.
    """
    H, W = input_resolution
    B, L, C = x.shape
    assert L == H * W, "input feature has wrong size"
    assert H % 2 == 0 and W % 2 == 0, f"x size ({H}*{W}) are not even."
    H2, W2 = H // 2, W // 2
    two_c = 2 * C
    wg_top, wg_bot, col_sum, bias = params

    x_bytes = x.dtype.itemsize
    o_bytes = x.dtype.itemsize

    param_specs = [
        pl.BlockSpec((two_c, two_c), lambda i: (0, 0)),   # Wg rows for [x0|x2]
        pl.BlockSpec((two_c, two_c), lambda i: (0, 0)),   # Wg rows for [x1|x3]
        pl.BlockSpec((1, two_c), lambda i: (0, 0)),       # colsum(Wg)
        pl.BlockSpec((1, two_c), lambda i: (0, 0)),       # beta @ W^T
    ]
    compiler_params = pltpu.CompilerParams(
        dimension_semantics=("parallel",),
        vmem_limit_bytes=48 * 1024 * 1024,
    )

    if W2 % 8 == 0:
        # Fused path: the 2x2 gather is expressed purely via BlockSpecs on a
        # free reshape of x -- the merged (M, 4C) tensor never touches HBM.
        R = B * H2
        xr = x.reshape(R, 2, W2, two_c)  # [row-pair, row-parity, col, (col-par, C)]
        rt = _pick_rows_per_block(R, W2, two_c, x_bytes, o_bytes,
                                  max_tokens_per_block, block_vmem_budget_bytes)
        grid = (pl.cdiv(R, rt),)
        in_specs = [
            pl.BlockSpec((rt, None, W2, two_c), lambda i: (i, 0, 0, 0)),  # even rows
            pl.BlockSpec((rt, None, W2, two_c), lambda i: (i, 1, 0, 0)),  # odd rows
        ] + param_specs
        out = pl.pallas_call(
            _merge_ln_reduce_kernel,
            out_shape=jax.ShapeDtypeStruct((R, W2, two_c), x.dtype),
            grid=grid,
            in_specs=in_specs,
            out_specs=pl.BlockSpec((rt, W2, two_c), lambda i: (i, 0, 0)),
            compiler_params=compiler_params,
        )(xr, xr, wg_top, wg_bot, col_sum, bias)
        return out.reshape(B, H2 * W2, two_c)

    # TODO(synk): fuse the gather for W//2 not a multiple of 8 as well; until
    # then materialize the two half-token planes and run the same kernel.
    M = B * H2 * W2
    xg = x.reshape(B, H2, 2, W2, 2, C)
    top = xg[:, :, 0].reshape(M, two_c)      # [x0 | x2]
    bot = xg[:, :, 1].reshape(M, two_c)      # [x1 | x3]
    tm = _pick_rows_per_block(M, 1, two_c, x_bytes, o_bytes,
                              max_tokens_per_block, block_vmem_budget_bytes)
    tm = min(M, max(8, tm - tm % 8))
    grid = (pl.cdiv(M, tm),)
    in_specs = [
        pl.BlockSpec((tm, two_c), lambda i: (i, 0)),
        pl.BlockSpec((tm, two_c), lambda i: (i, 0)),
    ] + param_specs
    out = pl.pallas_call(
        _merge_ln_reduce_kernel,
        out_shape=jax.ShapeDtypeStruct((M, two_c), x.dtype),
        grid=grid,
        in_specs=in_specs,
        out_specs=pl.BlockSpec((tm, two_c), lambda i: (i, 0)),
        compiler_params=compiler_params,
    )(top, bot, wg_top, wg_bot, col_sum, bias)
    return out.reshape(B, H2 * W2, two_c)


def reference_forward(x, input_resolution, gamma, beta, w_reduction):
    """Pure-JAX reference mirroring the PyTorch module."""
    H, W = input_resolution
    B, L, C = x.shape
    xg = x.reshape(B, H, W, C)
    x0 = xg[:, 0::2, 0::2, :]
    x1 = xg[:, 1::2, 0::2, :]
    x2 = xg[:, 0::2, 1::2, :]
    x3 = xg[:, 1::2, 1::2, :]
    xm = jnp.concatenate([x0, x1, x2, x3], axis=-1).reshape(B, -1, 4 * C)
    xm = xm.astype(jnp.float32)
    mean = jnp.mean(xm, axis=-1, keepdims=True)
    var = jnp.mean((xm - mean) ** 2, axis=-1, keepdims=True)
    xn = (xm - mean) / jnp.sqrt(var + LN_EPS)
    xn = xn * gamma + beta
    return (xn @ jnp.transpose(w_reduction).astype(jnp.float32)).astype(x.dtype)


if __name__ == "__main__":
    key = jax.random.PRNGKey(0)
    kx, kg, kb, kw, kx2 = jax.random.split(key, 5)

    # Case 1 (fused-gather path): input_resolution=(16, 16), dim=4.
    B, H, W, C = 2, 16, 16, 4
    x = jax.random.normal(kx, (B, H * W, C), dtype=jnp.float32)
    gamma = 1.0 + 0.1 * jax.random.normal(kg, (4 * C,), dtype=jnp.float32)
    beta = 0.1 * jax.random.normal(kb, (4 * C,), dtype=jnp.float32)
    w_reduction = 0.05 * jax.random.normal(kw, (2 * C, 4 * C), dtype=jnp.float32)

    params = prepare_patch_merging_params(gamma, beta, w_reduction)
    fwd = jax.jit(patch_merging_forward, static_argnums=(1,))

    y = jax.block_until_ready(fwd(x, (H, W), params))
    y_ref = reference_forward(x, (H, W), gamma, beta, w_reduction)
    assert y.shape == (B, (H // 2) * (W // 2), 2 * C), y.shape
    assert jnp.allclose(y, y_ref, atol=1e-4, rtol=1e-4), float(
        jnp.max(jnp.abs(y - y_ref)))

    # Case 2 (fallback path, W//2 not a multiple of 8): input_resolution=(8, 12).
    Hb, Wb = 8, 12
    xb = jax.random.normal(kx2, (B, Hb * Wb, C), dtype=jnp.float32)
    yb = jax.block_until_ready(fwd(xb, (Hb, Wb), params))
    yb_ref = reference_forward(xb, (Hb, Wb), gamma, beta, w_reduction)
    assert yb.shape == (B, (Hb // 2) * (Wb // 2), 2 * C), yb.shape
    assert jnp.allclose(yb, yb_ref, atol=1e-4, rtol=1e-4), float(
        jnp.max(jnp.abs(yb - yb_ref)))

    print("KERNEL_OK")
</pallas_src>

<mosaic_0001>
module attributes {stable_mosaic.version = 11 : i64} {
  func.func @_merge_ln_reduce_kernel(%arg0: i32, %arg1: memref<8x1x8x8xf32, #tpu.memory_space<vmem>>, %arg2: memref<8x1x8x8xf32, #tpu.memory_space<vmem>>, %arg3: memref<8x8xf32, #tpu.memory_space<vmem>>, %arg4: memref<8x8xf32, #tpu.memory_space<vmem>>, %arg5: memref<1x8xf32, #tpu.memory_space<vmem>>, %arg6: memref<1x8xf32, #tpu.memory_space<vmem>>, %arg7: memref<8x8x8xf32, #tpu.memory_space<vmem>>) attributes {dimension_semantics = [#tpu.dimension_semantics<parallel>], iteration_bounds = array<i64: 2>, scalar_prefetch = 0 : i64, scratch_operands = 0 : i64, tpu.core_type = #tpu.core_type<tc>, window_params = [{transform_indices = @transform_0, window_bounds = array<i64: 8, 1, 8, 8>}, {transform_indices = @transform_1, window_bounds = array<i64: 8, 1, 8, 8>}, {pipeline_mode = #tpu.pipeline_mode<synchronous>, transform_indices = @transform_2, window_bounds = array<i64: 8, 8>}, {pipeline_mode = #tpu.pipeline_mode<synchronous>, transform_indices = @transform_3, window_bounds = array<i64: 8, 8>}, {pipeline_mode = #tpu.pipeline_mode<synchronous>, transform_indices = @transform_4, window_bounds = array<i64: 1, 8>}, {pipeline_mode = #tpu.pipeline_mode<synchronous>, transform_indices = @transform_5, window_bounds = array<i64: 1, 8>}, {transform_indices = @transform_6, window_bounds = array<i64: 8, 8, 8>}]} {
    %c0 = arith.constant 0 : index
    %c0_0 = arith.constant 0 : index
    %c0_1 = arith.constant 0 : index
    %c0_2 = arith.constant 0 : index
    %0 = vector.load %arg1[%c0, %c0_0, %c0_1, %c0_2] : memref<8x1x8x8xf32, #tpu.memory_space<vmem>>, vector<8x1x8x8xf32>
    %1 = vector.shape_cast %0 : vector<8x1x8x8xf32> to vector<8x8x8xf32>
    %2 = vector.shape_cast %1 : vector<8x8x8xf32> to vector<64x8xf32>
    %c0_3 = arith.constant 0 : index
    %c0_4 = arith.constant 0 : index
    %c0_5 = arith.constant 0 : index
    %c0_6 = arith.constant 0 : index
    %3 = vector.load %arg2[%c0_3, %c0_4, %c0_5, %c0_6] : memref<8x1x8x8xf32, #tpu.memory_space<vmem>>, vector<8x1x8x8xf32>
    %4 = vector.shape_cast %3 : vector<8x1x8x8xf32> to vector<8x8x8xf32>
    %5 = vector.shape_cast %4 : vector<8x8x8xf32> to vector<64x8xf32>
    %c0_7 = arith.constant 0 : index
    %c0_8 = arith.constant 0 : index
    %6 = vector.load %arg3[%c0_7, %c0_8] : memref<8x8xf32, #tpu.memory_space<vmem>>, vector<8x8xf32>
    %c0_9 = arith.constant 0 : index
    %c0_10 = arith.constant 0 : index
    %7 = vector.load %arg4[%c0_9, %c0_10] : memref<8x8xf32, #tpu.memory_space<vmem>>, vector<8x8xf32>
    %cst = arith.constant dense<0.000000e+00> : vector<64x8xf32>
    %8 = tpu.matmul %2, %6, %cst {dimension_numbers = #tpu.dot_dimension_numbers<[1], [0], [0], [1], [0, 0, 1, 1], [], []>} : vector<64x8xf32>, vector<8x8xf32>, vector<64x8xf32> -> vector<64x8xf32>
    %cst_11 = arith.constant dense<0.000000e+00> : vector<64x8xf32>
    %9 = tpu.matmul %5, %7, %cst_11 {dimension_numbers = #tpu.dot_dimension_numbers<[1], [0], [0], [1], [0, 0, 1, 1], [], []>} : vector<64x8xf32>, vector<8x8xf32>, vector<64x8xf32> -> vector<64x8xf32>
    %10 = arith.addf %8, %9 : vector<64x8xf32>
    %cst_12 = arith.constant dense<0.000000e+00> : vector<64xf32>
    %11 = vector.multi_reduction <add>, %2, %cst_12 [1] : vector<64x8xf32> to vector<64xf32>
    %12 = vector.shape_cast %11 : vector<64xf32> to vector<64x1xf32>
    %cst_13 = arith.constant dense<0.000000e+00> : vector<64xf32>
    %13 = vector.multi_reduction <add>, %5, %cst_13 [1] : vector<64x8xf32> to vector<64xf32>
    %14 = vector.shape_cast %13 : vector<64xf32> to vector<64x1xf32>
    %15 = arith.addf %12, %14 : vector<64x1xf32>
    %16 = arith.mulf %2, %2 : vector<64x8xf32>
    %cst_14 = arith.constant dense<0.000000e+00> : vector<64xf32>
    %17 = vector.multi_reduction <add>, %16, %cst_14 [1] : vector<64x8xf32> to vector<64xf32>
    %18 = vector.shape_cast %17 : vector<64xf32> to vector<64x1xf32>
    %19 = arith.mulf %5, %5 : vector<64x8xf32>
    %cst_15 = arith.constant dense<0.000000e+00> : vector<64xf32>
    %20 = vector.multi_reduction <add>, %19, %cst_15 [1] : vector<64x8xf32> to vector<64xf32>
    %21 = vector.shape_cast %20 : vector<64xf32> to vector<64x1xf32>
    %22 = arith.addf %18, %21 : vector<64x1xf32>
    %cst_16 = arith.constant 6.250000e-02 : f32
    %23 = vector.broadcast %cst_16 : f32 to vector<64x1xf32>
    %24 = arith.mulf %15, %23 : vector<64x1xf32>
    %cst_17 = arith.constant 6.250000e-02 : f32
    %25 = vector.broadcast %cst_17 : f32 to vector<64x1xf32>
    %26 = arith.mulf %22, %25 : vector<64x1xf32>
    %27 = arith.mulf %24, %24 : vector<64x1xf32>
    %28 = arith.subf %26, %27 : vector<64x1xf32>
    %cst_18 = arith.constant 9.99999974E-6 : f32
    %29 = vector.broadcast %cst_18 : f32 to vector<64x1xf32>
    %30 = arith.addf %28, %29 : vector<64x1xf32>
    %31 = math.rsqrt %30 : vector<64x1xf32>
    %32 = vector.broadcast %31 : vector<64x1xf32> to vector<64x8xf32>
    %33 = arith.mulf %10, %32 : vector<64x8xf32>
    %34 = arith.mulf %24, %31 : vector<64x1xf32>
    %c0_19 = arith.constant 0 : index
    %c0_20 = arith.constant 0 : index
    %35 = vector.load %arg5[%c0_19, %c0_20] : memref<1x8xf32, #tpu.memory_space<vmem>>, vector<1x8xf32>
    %36 = vector.broadcast %34 : vector<64x1xf32> to vector<64x8xf32>
    %37 = vector.broadcast %35 : vector<1x8xf32> to vector<64x8xf32>
    %38 = arith.mulf %36, %37 : vector<64x8xf32>
    %39 = arith.subf %33, %38 : vector<64x8xf32>
    %c0_21 = arith.constant 0 : index
    %c0_22 = arith.constant 0 : index
    %40 = vector.load %arg6[%c0_21, %c0_22] : memref<1x8xf32, #tpu.memory_space<vmem>>, vector<1x8xf32>
    %41 = vector.broadcast %40 : vector<1x8xf32> to vector<64x8xf32>
    %42 = arith.addf %39, %41 : vector<64x8xf32>
    %43 = vector.shape_cast %42 : vector<64x8xf32> to vector<8x8x8xf32>
    %c0_23 = arith.constant 0 : index
    %c0_24 = arith.constant 0 : index
    %c0_25 = arith.constant 0 : index
    %44 = vector.load %arg7[%c0_23, %c0_24, %c0_25] : memref<8x8x8xf32, #tpu.memory_space<vmem>>, vector<8x8x8xf32>
    tpu.vector_store %arg7[%c0_23, %c0_24, %c0_25], %43 {strides = array<i32>} : memref<8x8x8xf32, #tpu.memory_space<vmem>>, vector<8x8x8xf32>,
    return
  }
  func.func @transform_0(%arg0: i32) -> (i32, i32, i32, i32) {
    %c0_i32 = arith.constant 0 : i32
    %c0_i32_0 = arith.constant 0 : i32
    %c0_i32_1 = arith.constant 0 : i32
    %c0_i32_2 = arith.constant 0 : i32
    return %arg0, %c0_i32, %c0_i32_0, %c0_i32_1 : i32, i32, i32, i32
  }
  func.func @transform_1(%arg0: i32) -> (i32, i32, i32, i32) {
    %c1_i32 = arith.constant 1 : i32
    %c0_i32 = arith.constant 0 : i32
    %c0_i32_0 = arith.constant 0 : i32
    %c0_i32_1 = arith.constant 0 : i32
    return %arg0, %c1_i32, %c0_i32, %c0_i32_0 : i32, i32, i32, i32
  }
  func.func @transform_2(%arg0: i32) -> (i32, i32) {
    %c0_i32 = arith.constant 0 : i32
    %c0_i32_0 = arith.constant 0 : i32
    %c0_i32_1 = arith.constant 0 : i32
    return %c0_i32, %c0_i32_0 : i32, i32
  }
  func.func @transform_3(%arg0: i32) -> (i32, i32) {
    %c0_i32 = arith.constant 0 : i32
    %c0_i32_0 = arith.constant 0 : i32
    %c0_i32_1 = arith.constant 0 : i32
    return %c0_i32, %c0_i32_0 : i32, i32
  }
  func.func @transform_4(%arg0: i32) -> (i32, i32) {
    %c0_i32 = arith.constant 0 : i32
    %c0_i32_0 = arith.constant 0 : i32
    %c0_i32_1 = arith.constant 0 : i32
    return %c0_i32, %c0_i32_0 : i32, i32
  }
  func.func @transform_5(%arg0: i32) -> (i32, i32) {
    %c0_i32 = arith.constant 0 : i32
    %c0_i32_0 = arith.constant 0 : i32
    %c0_i32_1 = arith.constant 0 : i32
    return %c0_i32, %c0_i32_0 : i32, i32
  }
  func.func @transform_6(%arg0: i32) -> (i32, i32, i32) {
    %c0_i32 = arith.constant 0 : i32
    %c0_i32_0 = arith.constant 0 : i32
    %c0_i32_1 = arith.constant 0 : i32
    return %arg0, %c0_i32, %c0_i32_0 : i32, i32, i32
  }
}

</mosaic_0001>

<bundles_post_ra>
// kernel: patch_merging_forward.1
= control target key start
LH: loop header
LB: loop body
LE: loop exit
PB: predicated region body
PF: predicated region fallthrough
CT: control target
= control target key end

     0   :  { %s1089_s21 = smov 0   ;;  %s1091_s22 = smov 0   ;;  %s1521_s0 = inlined_call_operand.vmem [shape: f32[16,2,8,8], index: 0, kind: input, shape index: {}, may-alias: {0,1}]   ;;  %s1522_s1 = inlined_call_operand.vmem [shape: f32[16,2,8,8], index: 1, kind: input, shape index: {}, may-alias: {0,1}]   ;;  %s1523_s2 = inlined_call_operand.vmem [shape: f32[8,8], index: 2, kind: input, shape index: {}]   ;;  %s1524_s3 = inlined_call_operand.vmem [shape: f32[8,8], index: 3, kind: input, shape index: {}]   ;;  %s1525_s4 = inlined_call_operand.vmem [shape: f32[1,8], index: 4, kind: input, shape index: {}]   ;;  %s1526_s5 = inlined_call_operand.vmem [shape: f32[1,8], index: 5, kind: input, shape index: {}]   ;;  %s1527_s6 = inlined_call_operand.vmem [shape: f32[16,8,8], index: 6, kind: output, shape index: {}]  }
   0x1   :  { %s1093_s23 = smov 0  }
   0x2 LB: > { %s941_s24 = sadd.s32 4294967295, %s1052_s23   ;;  %s1106_s25 = sadd.s32 1, %s1052_s23   ;;  %s1052_s23 = sphi %s1093_s23, %s1531_s23   ;;  %s1048_s22 = sphi %s1091_s22, %s1530_s22   ;;  %s1044_s21 = sphi %s1089_s21, %s1529_s21  }
   0x3   : > { %s20_s26 = ssub.s32 %s1052_s23, %s1106_s25  ;;  %s23_s27 = sadd.s32 1, %s1048_s22 }
   0x4   : > { %p21_p0 = scmp.eq.s32.totalorder %s20_s26, 0  ;;  %p30_p1 = scmp.ne.s32.totalorder %s1048_s22, %s1044_s21 }
   0x5   : > { %p31_p2 = scmp.eq.s32.totalorder %s1052_s23, 0  ;;  %p944_p4 = scmp.ge.s32.totalorder %s1052_s23, 2 }
   0x6   : > { %s1115_s28 = scalar_select %p21_p0, %s1048_s22, %s23_s27  }
   0x7   : > { %p1117_p3 = por %p31_p2, %p30_p1  ;;  %204 = sbr.rel (%p944_p4) target bundleno = 36 (0x24), region = 32 }
   0xc   : > { %207 = sbr.rel (!%p1117_p3) target bundleno = 24 (0x18), region = 36  ;;  %s209_s30 = sand.u32 (%p1117_p3), 1, %s1048_s22  }
   0xd   : > { %s984_s7 = sshll.u32 (%p1117_p3), %s1052_s23, 7  ;;  %s945_s8 = sshll.u32 (%p1117_p3), %s209_s30, 6 }
   0xe   : > { %s215_s11 = scalar_lea.vmem (%p1117_p3), %s1521_s0, %s984_s7  ;;  %s211_s12 = scalar_lea.vmem (%p1117_p3), [#allocation2], %s945_s8 }
   0xf   : > { %v258_v0 = vld [vmem:[%s215_s11] sm:$0xff] (%p1117_p3)  ;;  %v260_v1 = vld [vmem:[%s215_s11 + $0x10] sm:$0xff] (%p1117_p3) }
  0x10   : > { %v262_v2 = vld [vmem:[%s215_s11 + $0x20] sm:$0xff] (%p1117_p3)  ;;  %259 = vst [vmem:[%s211_s12] sm:$0xff] (%p1117_p3), %v258_v0  ;;  %v264_v3 = vld [vmem:[%s215_s11 + $0x30] sm:$0xff] (%p1117_p3) }
  0x11   : > { %261 = vst [vmem:[%s211_s12 + $0x8] sm:$0xff] %v260_v1  ;;  %v266_v4 = vld [vmem:[%s215_s11 + $0x40] sm:$0xff]  ;;  %v268_v5 = vld [vmem:[%s215_s11 + $0x50] sm:$0xff] }
  0x12   : > { %263 = vst [vmem:[%s211_s12 + $0x10] sm:$0xff] %v262_v2  ;;  %v270_v6 = vld [vmem:[%s215_s11 + $0x60] sm:$0xff]  ;;  %v272_v7 = vld [vmem:[%s215_s11 + $0x70] sm:$0xff] }
  0x13   : > { %265 = vst [vmem:[%s211_s12 + $0x18] sm:$0xff] %v264_v3 }
  0x14   : > { %267 = vst [vmem:[%s211_s12 + $0x20] sm:$0xff] %v266_v4 }
  0x15   : > { %269 = vst [vmem:[%s211_s12 + $0x28] sm:$0xff] %v268_v5 }
  0x16   : > { %271 = vst [vmem:[%s211_s12 + $0x30] sm:$0xff] %v270_v6 }
  0x17   : > { %273 = vst [vmem:[%s211_s12 + $0x38] sm:$0xff] %v272_v7 }
  0x18 PF: > { %279 = sbr.rel (!%p1117_p3) target bundleno = 36 (0x24), region = 74  ;;  %s281_s13 = sand.u32 (%p1117_p3), 1, %s1048_s22  }
  0x19   : > { %s985_s14 = sshll.u32 (%p1117_p3), %s1052_s23, 7  ;;  %s949_s15 = sshll.u32 (%p1117_p3), %s281_s13, 6 }
  0x1a   : > { %s889_s18 = scalar_lea.vmem (%p1117_p3), %s1522_s1, %s985_s14  ;;  %s283_s19 = scalar_lea.vmem (%p1117_p3), [#allocation3], %s949_s15 }
  0x1b   : > { %v952_v8 = vld [vmem:[%s889_s18 + $0x8] sm:$0xff] (%p1117_p3)  ;;  %v953_v9 = vld [vmem:[%s889_s18 + $0x18] sm:$0xff] (%p1117_p3) }
  0x1c   : > { %v954_v10 = vld [vmem:[%s889_s18 + $0x28] sm:$0xff] (%p1117_p3)  ;;  %332 = vst [vmem:[%s283_s19] sm:$0xff] (%p1117_p3), %v952_v8  ;;  %v955_v11 = vld [vmem:[%s889_s18 + $0x38] sm:$0xff] (%p1117_p3) }
  0x1d   : > { %334 = vst [vmem:[%s283_s19 + $0x8] sm:$0xff] %v953_v9  ;;  %v956_v12 = vld [vmem:[%s889_s18 + $0x48] sm:$0xff]  ;;  %v957_v13 = vld [vmem:[%s889_s18 + $0x58] sm:$0xff] }
  0x1e   : > { %336 = vst [vmem:[%s283_s19 + $0x10] sm:$0xff] %v954_v10  ;;  %v958_v14 = vld [vmem:[%s889_s18 + $0x68] sm:$0xff]  ;;  %v959_v15 = vld [vmem:[%s889_s18 + $0x78] sm:$0xff] }
  0x1f   : > { %338 = vst [vmem:[%s283_s19 + $0x18] sm:$0xff] %v955_v11 }
  0x20   : > { %340 = vst [vmem:[%s283_s19 + $0x20] sm:$0xff] %v956_v12 }
  0x21   : > { %342 = vst [vmem:[%s283_s19 + $0x28] sm:$0xff] %v957_v13 }
  0x22   : > { %344 = vst [vmem:[%s283_s19 + $0x30] sm:$0xff] %v958_v14 }
  0x23   : > { %346 = vst [vmem:[%s283_s19 + $0x38] sm:$0xff] %v959_v15 }
  0x24 PF: > { %p960_p5 = scmp.ge.s32.totalorder %s1052_s23, 1  ;;  %p351_p6 = scmp.lt.s32.totalorder %s1052_s23, 3 }
  0x26   : > { %p352_p7 = pnand %p960_p5, %p351_p6 }
  0x27   : > { %s358_s20 = sand.u32 (!%p352_p7), 1, %s1044_s21   ;;  %s1352_s9 = sshll.u32 (!%p352_p7), %s941_s24, 3 }
  0x28   : > { %355 = sbr.rel (%p352_p7) target bundleno = 281 (0x119), region = 112  ;;  %s961_s26 = sshll.u32 (!%p352_p7), %s358_s20, 6 }
  0x29   : > { %s360_s27 = scalar_lea.vmem (!%p352_p7), [#allocation2], %s961_s26  ;;  %s1157_s21 = scalar_lea.vmem (!%p352_p7), [#allocation3], %s961_s26 }
  0x2a   : > { %p401_p8 = scmp.lt.s32.totalorder (!%p352_p7), %s1352_s9, 15 }
  0x2d   : > { %vm424_vm0 = vcmask 64512   ;;  %v1139_v16 = vld [vmem:[%s360_s27 + $0x20] sm:$0xff]  ;;  %v1141_v17 = vld [vmem:[%s360_s27 + $0x10] sm:$0xff]  ;;  %v1148_v22 = vld [vmem:[%s360_s27 + $0x28] sm:$0xff]  ;;  %s1533_s9 = smov (!%p401_p8, %s1352_s9), 15 }
  0x2e   : > { %v406_v18 = vld [vmem:[%s360_s27] sm:$0xff]  ;;  %v567_v19 = vsel %vm424_vm0, %v1139_v16, 0.0  ;;  %v561_v20 = vsel %vm424_vm0, %v1141_v17, 0.0  ;;  %v1150_v23 = vld [vmem:[%s360_s27 + $0x18] sm:$0xff]  ;;  %v407_v24 = vld [vmem:[%s360_s27 + $0x8] sm:$0xff]  ;;  %v570_v25 = vsel %vm424_vm0, %v1148_v22, 0.0  ;;  %v615_v54 = vmul.f32 %v1139_v16, %v1139_v16 }
  0x2f   : > { %v555_v21 = vsel %vm424_vm0, %v406_v18, 0.0  ;;  %568 = vadd.xlane.f32.xlu2 %v567_v19  ;;  %562 = vadd.xlane.f32.xlu1 %v561_v20  ;;  %v564_v26 = vsel %vm424_vm0, %v1150_v23, 0.0  ;;  %v558_v27 = vsel %vm424_vm0, %v407_v24, 0.0  ;;  %v1160_v28 = vld [vmem:[%s1157_s21] sm:$0xff]  ;;  %v1162_v29 = vld [vmem:[%s360_s27 + $0x38] sm:$0xff]  ;;  %v412_v30 = vld [vmem:[%s360_s27 + $0x30] sm:$0xff]  ;;  %v612_v48 = vmul.f32 %v407_v24, %v407_v24 }
  0x30   : > { %556 = vadd.xlane.f32.xlu0 %v555_v21  ;;  %v579_v31 = vsel %vm424_vm0, %v1160_v28, 0.0  ;;  %v576_v32 = vsel %vm424_vm0, %v1162_v29, 0.0  ;;  %v573_v33 = vsel %vm424_vm0, %v412_v30, 0.0  ;;  %v1170_v34 = vld [vmem:[%s1157_s21 + $0x18] sm:$0xff]  ;;  %v1173_v35 = vld [vmem:[%s1157_s21 + $0x10] sm:$0xff]  ;;  %v1176_v36 = vld [vmem:[%s1157_s21 + $0x8] sm:$0xff]  ;;  %v611_v49 = vmul.f32 %v406_v18, %v406_v18 }
  0x31   : > { %v588_v37 = vsel %vm424_vm0, %v1170_v34, 0.0  ;;  %v585_v38 = vsel %vm424_vm0, %v1173_v35, 0.0  ;;  %v582_v39 = vsel %vm424_vm0, %v1176_v36, 0.0  ;;  %v423_v40 = vld [vmem:[%s1524_s3] sm:$0xff]  ;;  %v1191_v42 = vld [vmem:[%s1157_s21 + $0x30] sm:$0xff]  ;;  %v1194_v43 = vld [vmem:[%s1157_s21 + $0x28] sm:$0xff]  ;;  %v614_v55 = vmul.f32 %v1150_v23, %v1150_v23 }
  0x32   : > { %v422_v41 = vld [vmem:[%s1523_s2] sm:$0xff]  ;;  %464 = vmatpush.msra.mxu0 %v423_v40  ;;  %986 = vmatpush.msra.mxu2 %v423_v40  ;;  %v597_v45 = vsel %vm424_vm0, %v1191_v42, 0.0  ;;  %v594_v46 = vsel %vm424_vm0, %v1194_v43, 0.0  ;;  %v421_v50 = vld [vmem:[%s1157_s21 + $0x38] sm:$0xff]  ;;  %v622_v51 = vsel %vm424_vm0, %v612_v48, 0.0  ;;  %v619_v52 = vsel %vm424_vm0, %v611_v49, 0.0 }
  0x33   : > { %529 = vmatpush.msra.mxu1 %v422_v41  ;;  %v418_v44 = vld [vmem:[%s1157_s21 + $0x20] sm:$0xff]  ;;  %965 = vmatmul.msk.f32.vlgmr.msra.gmra.mxu0 %vm424_vm0, %v1160_v28  ;;  %v600_v53 = vsel %vm424_vm0, %v421_v50, 0.0  ;;  %v613_v56 = vmul.f32 %v1141_v17, %v1141_v17  ;;  %v631_v57 = vsel %vm424_vm0, %v615_v54, 0.0  ;;  %v628_v58 = vsel %vm424_vm0, %v614_v55, 0.0  ;;  %s964_s10 = sshll.u32 %s1533_s9, 3 }
  0x34   : > { %973 = vmatmul.msk.f32.vlgmr.msra.gmra.mxu1 %vm424_vm0, %v406_v18  ;;  %987 = vmatpush.msra.mxu3 %v422_v41  ;;  %v591_v47 = vsel %vm424_vm0, %v418_v44, 0.0  ;;  %v618_v60 = vmul.f32 %v1162_v29, %v1162_v29  ;;  %v617_v61 = vmul.f32 %v412_v30, %v412_v30  ;;  %v616_v62 = vmul.f32 %v1148_v22, %v1148_v22  ;;  %s1442_s15 = scalar_lea.vmem %s1527_s6, %s964_s10 }
  0x35   : > { %969 = vmatmul.msk.f32.vlgmr.msra.gmra.mxu2 %vm424_vm0, %v418_v44  ;;  %977 = vmatmul.msk.f32.vlgmr.msra.gmra.mxu3 %vm424_vm0, %v1139_v16  ;;  %v625_v59 = vsel %vm424_vm0, %v613_v56, 0.0  ;;  %v645_v2 = vmul.f32 %v1173_v35, %v1173_v35  ;;  %v644_v3 = vmul.f32 %v1176_v36, %v1176_v36  ;;  %v643_v4 = vmul.f32 %v1160_v28, %v1160_v28 }
  0x36   : > { %v640_v63 = vsel %vm424_vm0, %v618_v60, 0.0  ;;  %v637_v0 = vsel %vm424_vm0, %v617_v61, 0.0  ;;  %v634_v1 = vsel %vm424_vm0, %v616_v62, 0.0  ;;  %v648_v8 = vmul.f32 %v1194_v43, %v1194_v43 }
  0x37   : > { %571 = vadd.xlane.f32.xlu2 %v570_v25  ;;  %565 = vadd.xlane.f32.xlu1 %v564_v26  ;;  %v657_v5 = vsel %vm424_vm0, %v645_v2, 0.0  ;;  %v654_v6 = vsel %vm424_vm0, %v644_v3, 0.0  ;;  %v651_v7 = vsel %vm424_vm0, %v643_v4, 0.0  ;;  %v647_v9 = vmul.f32 %v418_v44, %v418_v44 }
  0x38   : > { %559 = vadd.xlane.f32.xlu0 %v558_v27  ;;  %v646_v10 = vmul.f32 %v1170_v34, %v1170_v34  ;;  %v666_v11 = vsel %vm424_vm0, %v648_v8, 0.0  ;;  %v650_v14 = vmul.f32 %v421_v50, %v421_v50  ;;  %v649_v15 = vmul.f32 %v1191_v42, %v1191_v42 }
  0x39   : > { %v663_v12 = vsel %vm424_vm0, %v647_v9, 0.0 }
  0x3a   : > { %v660_v13 = vsel %vm424_vm0, %v646_v10, 0.0  ;;  %v672_v16 = vsel %vm424_vm0, %v650_v14, 0.0 }
  0x3b   : > { %966 = vmatmul.msk.f32.gmra.mxu0 %vm424_vm0, %v1176_v36 }
  0x3c   : > { %974 = vmatmul.msk.f32.gmra.mxu1 %vm424_vm0, %v407_v24 }
  0x3d   : > { %970 = vmatmul.msk.f32.gmra.mxu2 %vm424_vm0, %v1194_v43  ;;  %978 = vmatmul.msk.f32.gmra.mxu3 %vm424_vm0, %v1148_v22 }
  0x3f   : > { %580 = vadd.xlane.f32.xlu2 %v579_v31  ;;  %577 = vadd.xlane.f32.xlu1 %v576_v32 }
  0x40   : > { %574 = vadd.xlane.f32.xlu0 %v573_v33 }
  0x43   : > { %967 = vmatmul.msk.f32.gmra.mxu0 %vm424_vm0, %v1173_v35 }
  0x44   : > { %975 = vmatmul.msk.f32.gmra.mxu1 %vm424_vm0, %v1141_v17  ;;  %v669_v17 = vsel %vm424_vm0, %v649_v15, 0.0 }
  0x45   : > { %971 = vmatmul.msk.f32.gmra.mxu2 %vm424_vm0, %v1191_v42  ;;  %979 = vmatmul.msk.f32.gmra.mxu3 %vm424_vm0, %v412_v30 }
  0x47   : > { %589 = vadd.xlane.f32.xlu2 %v588_v37  ;;  %586 = vadd.xlane.f32.xlu1 %v585_v38 }
  0x48   : > { %583 = vadd.xlane.f32.xlu0 %v582_v39 }
  0x4b   : > { %968 = vmatmul.msk.f32.gmra.mxu0 %vm424_vm0, %v1170_v34 }
  0x4c   : > { %976 = vmatmul.msk.f32.gmra.mxu1 %vm424_vm0, %v1150_v23 }
  0x4d   : > { %972 = vmatmul.msk.f32.gmra.mxu2 %vm424_vm0, %v421_v50  ;;  %980 = vmatmul.msk.f32.gmra.mxu3 %vm424_vm0, %v1162_v29 }
  0x4f   : > { %598 = vadd.xlane.f32.xlu2 %v597_v45  ;;  %595 = vadd.xlane.f32.xlu1 %v594_v46 }
  0x50   : > { %592 = vadd.xlane.f32.xlu0 %v591_v47 }
  0x57   : > { %623 = vadd.xlane.f32.xlu2 %v622_v51  ;;  %620 = vadd.xlane.f32.xlu1 %v619_v52 }
  0x58   : > { %601 = vadd.xlane.f32.xlu0 %v600_v53 }
  0x5f   : > { %632 = vadd.xlane.f32.xlu2 %v631_v57  ;;  %629 = vadd.xlane.f32.xlu1 %v628_v58 }
  0x60   : > { %626 = vadd.xlane.f32.xlu0 %v625_v59 }
  0x67   : > { %641 = vadd.xlane.f32.xlu2 %v640_v63  ;;  %638 = vadd.xlane.f32.xlu1 %v637_v0 }
  0x68   : > { %635 = vadd.xlane.f32.xlu0 %v634_v1 }
  0x6f   : > { %658 = vadd.xlane.f32.xlu2 %v657_v5  ;;  %655 = vadd.xlane.f32.xlu1 %v654_v6 }
  0x70   : > { %652 = vadd.xlane.f32.xlu0 %v651_v7 }
  0x77   : > { %667 = vadd.xlane.f32.xlu2 %v666_v11  ;;  %664 = vadd.xlane.f32.xlu1 %v663_v12 }
  0x78   : > { %661 = vadd.xlane.f32.xlu0 %v660_v13 }
  0x7f   : > { %673 = vadd.xlane.f32.xlu1 %v672_v16 }
  0x80   : > { %670 = vadd.xlane.f32.xlu0 %v669_v17 }
  0xa2   : > { %v569_v18 = vpop.xlane.xlu2 %568  ;;  %v563_v19 = vpop.xlane.xlu1 %562 }
  0xa3   : > { %v557_v20 = vpop.xlane.xlu0 %556 }
  0xaa   : > { %v572_v21 = vpop.xlane.xlu2 %571  ;;  %v566_v22 = vpop.xlane.xlu1 %565 }
  0xab   : > { %v560_v23 = vpop.xlane.xlu0 %559 }
  0xb0   : > { %v1273_v45 = vpop.f32.mrf.mxu0 }
  0xb1   : > { %v1275_v46 = vpop.f32.mrf.mxu1 }
  0xb2   : > { %v581_v24 = vpop.xlane.xlu2 %580  ;;  %v578_v25 = vpop.xlane.xlu1 %577 }
  0xb3   : > { %v575_v26 = vpop.xlane.xlu0 %574  ;;  %v603_v44 = vadd.f32 %v581_v24, %v557_v20 }
  0xb5   : > { %v1281_v49 = vmul.f32 0.0625, %v603_v44 }
  0xb7   : > { %v699_v62 = vmul.f32 %v1281_v49, %v1281_v49 }
  0xb8   : > { %v469_v5 = vpop.f32.mrf.mxu0  ;;  %v1308_v24 = vpop.f32.mrf.mxu2 }
  0xb9   : > { %v534_v9 = vpop.f32.mrf.mxu1 }
  0xba   : > { %v590_v27 = vpop.xlane.xlu2 %589  ;;  %v587_v28 = vpop.xlane.xlu1 %586 }
  0xbb   : > { %v584_v29 = vpop.xlane.xlu0 %583  ;;  %v605_v42 = vadd.f32 %v587_v28, %v563_v19  ;;  %v606_v63 = vadd.f32 %v590_v27, %v566_v22 }
  0xbc   : > { %v604_v43 = vadd.f32 %v584_v29, %v560_v23 }
  0xbd   : > { %v1277_v47 = vmul.f32 0.0625, %v605_v42  ;;  %v1297_v10 = vmul.f32 0.0625, %v606_v63 }
  0xbe   : > { %v1279_v48 = vmul.f32 0.0625, %v604_v43 }
  0xbf   : > { %v701_v55 = vmul.f32 %v1277_v47, %v1277_v47 }
  0xc0   : > { %v700_v58 = vmul.f32 %v1279_v48, %v1279_v48  ;;  %v472_v44 = vpop.f32.mrf.mxu0 }
  0xc2   : > { %v599_v30 = vpop.xlane.xlu2 %598  ;;  %v596_v31 = vpop.xlane.xlu1 %595 }
  0xc3   : > { %v593_v32 = vpop.xlane.xlu0 %592  ;;  %v608_v56 = vadd.f32 %v596_v31, %v572_v21  ;;  %v609_v11 = vadd.f32 %v599_v30, %v575_v26  ;;  %v702_v26 = vmul.f32 %v1297_v10, %v1297_v10 }
  0xc4   : > { %v607_v59 = vadd.f32 %v593_v32, %v569_v18 }
  0xc5   : > { %v1289_v3 = vmul.f32 0.0625, %v608_v56  ;;  %v1314_v27 = vmul.f32 0.0625, %v609_v11 }
  0xc6   : > { %v1291_v6 = vmul.f32 0.0625, %v607_v59 }
  0xc7   : > { %v704_v19 = vmul.f32 %v1289_v3, %v1289_v3 }
  0xc8   : > { %v703_v21 = vmul.f32 %v1291_v6, %v1291_v6 }
  0xca   : > { %v624_v33 = vpop.xlane.xlu2 %623  ;;  %v621_v34 = vpop.xlane.xlu1 %620 }
  0xcb   : > { %v602_v35 = vpop.xlane.xlu0 %601 }
  0xcc   : > { %v610_v12 = vadd.f32 %v602_v35, %v578_v25  ;;  %v1310_v25 = vpop.f32.mrf.mxu3 }
  0xce   : > { %v1316_v28 = vmul.f32 0.0625, %v610_v12 }
  0xd2   : > { %v633_v36 = vpop.xlane.xlu2 %632  ;;  %v630_v37 = vpop.xlane.xlu1 %629 }
  0xd3   : > { %v627_v38 = vpop.xlane.xlu0 %626 }
  0xda   : > { %v1269_v39 = vpop.xlane.xlu2 %641  ;;  %v1271_v40 = vpop.xlane.xlu1 %638 }
  0xdb   : > { %v636_v41 = vpop.xlane.xlu0 %635 }
  0xe2   : > { %v659_v50 = vpop.xlane.xlu2 %658  ;;  %v656_v51 = vpop.xlane.xlu1 %655 }
  0xe3   : > { %v677_v52 = vadd.f32 %v659_v50, %v627_v38  ;;  %v676_v53 = vadd.f32 %v656_v51, %v624_v33  ;;  %v653_v54 = vpop.xlane.xlu0 %652  ;;  %v706_v38 = vmul.f32 %v1316_v28, %v1316_v28 }
  0xe4   : > { %v675_v57 = vadd.f32 %v653_v54, %v621_v34 }
  0xe5   : > { %v693_v60 = vmul.f32 0.0625, %v677_v52  ;;  %v692_v61 = vmul.f32 0.0625, %v676_v53  ;;  %v1339_v52 = vadd.f32 %v1275_v46, %v1273_v45 }
  0xe6   : > { %v691_v0 = vmul.f32 0.0625, %v675_v57 }
  0xe7   : > { %v709_v1 = vsub.f32 %v693_v60, %v701_v55  ;;  %v708_v2 = vsub.f32 %v692_v61, %v700_v58  ;;  %v537_v55 = vpop.f32.mrf.mxu1  ;;  %v1345_v58 = vadd.f32 %v534_v9, %v469_v5 }
  0xe8   : > { %v707_v4 = vsub.f32 %v691_v0, %v699_v62 }
  0xe9   : > { %v1293_v7 = vadd.f32 1e-05, %v709_v1  ;;  %v1295_v8 = vadd.f32 1e-05, %v708_v2  ;;  %v1356_v1 = vpop.f32.mrf.mxu2  ;;  %v1358_v2 = vpop.f32.mrf.mxu3 }
  0xea   : > { %v1299_v13 = vadd.f32 1e-05, %v707_v4  ;;  %v668_v14 = vpop.xlane.xlu2 %667  ;;  %v665_v15 = vpop.xlane.xlu1 %664 }
  0xeb   : > { %1014 = vrsqrt.f32 %v1293_v7  ;;  %v680_v16 = vadd.f32 %v668_v14, %v636_v41  ;;  %v679_v17 = vadd.f32 %v665_v15, %v633_v36  ;;  %v662_v18 = vpop.xlane.xlu0 %661  ;;  %vm739_vm1 = vweird.f32 %v1295_v8 }
  0xec   : > { %1016 = vrsqrt.f32 %v1295_v8  ;;  %v678_v20 = vadd.f32 %v662_v18, %v630_v37  ;;  %v705_v37 = vmul.f32 %v1314_v27, %v1314_v27  ;;  %vm729_vm2 = vweird.f32 %v1299_v13 }
  0xed   : > { %1018 = vrsqrt.f32 %v1299_v13  ;;  %v696_v22 = vmul.f32 0.0625, %v680_v16  ;;  %v695_v23 = vmul.f32 0.0625, %v679_v17  ;;  %vm749_vm3 = vweird.f32 %v1293_v7 }
  0xee   : > { %v694_v29 = vmul.f32 0.0625, %v678_v20 }
  0xef   : > { %v712_v30 = vsub.f32 %v696_v22, %v704_v19  ;;  %v711_v31 = vsub.f32 %v695_v23, %v703_v21 }
  0xf0   : > { %v710_v32 = vsub.f32 %v694_v29, %v702_v26 }
  0xf1   : > { %v1318_v33 = vpop.eup %1014  ;;  %v1320_v34 = vadd.f32 1e-05, %v712_v30  ;;  %v1322_v35 = vadd.f32 1e-05, %v711_v31 }
  0xf2   : > { %v1324_v36 = vpop.eup %1016  ;;  %v744_v41 = vmul.f32 %v1318_v33, %v1293_v7  ;;  %v1332_v42 = vadd.f32 1e-05, %v710_v32  ;;  %v674_v43 = vpop.xlane.xlu1 %673  ;;  %vm750_vm4 = vweird.f32 %v1318_v33  ;;  %v1402_v7 = vld [vmem:[%s1525_s4] ss:$0 sm:$0xff] }
  0xf3   : > { %v1019_v50 = vpop.eup %1018  ;;  %v734_v51 = vmul.f32 %v1324_v36, %v1295_v8  ;;  %1020 = vrsqrt.f32 %v1320_v34  ;;  %v682_v53 = vadd.f32 %v674_v43, %v1269_v39  ;;  %v671_v54 = vpop.xlane.xlu0 %670  ;;  %v538_v39 = vadd.f32 %v537_v55, %v472_v44  ;;  %vm751_vm8 = vmor %vm749_vm3, %vm750_vm4 }
  0xf4   : > { %v745_v56 = vmul.f32 %v1318_v33, %v744_v41  ;;  %v724_v57 = vmul.f32 %v1019_v50, %v1299_v13  ;;  %1022 = vrsqrt.f32 %v1322_v35  ;;  %v681_v45 = vadd.f32 %v671_v54, %v1271_v40 }
  0xf5   : > { %v735_v59 = vmul.f32 %v1324_v36, %v734_v51  ;;  %1024 = vrsqrt.f32 %v1332_v42  ;;  %v698_v60 = vmul.f32 0.0625, %v682_v53  ;;  %vm730_vm5 = vweird.f32 %v1019_v50 }
  0xf6   : > { %v725_v46 = vmul.f32 %v1019_v50, %v724_v57  ;;  %v746_v61 = vmul.f32 0.5, %v745_v56  ;;  %v697_v63 = vmul.f32 0.0625, %v681_v45  ;;  %vm740_vm6 = vweird.f32 %v1324_v36  ;;  %vm731_vm9 = vmor %vm729_vm2, %vm730_vm5 }
  0xf7   : > { %v714_v62 = vsub.f32 %v698_v60, %v706_v38  ;;  %v736_v0 = vmul.f32 0.5, %v735_v59  ;;  %vm769_vm7 = vweird.f32 %v1322_v35  ;;  %vm779_vm10 = vweird.f32 %v1320_v34  ;;  %vm741_vm11 = vmor %vm739_vm1, %vm740_vm6 }
  0xf8   : > { %v726_v4 = vmul.f32 0.5, %v725_v46  ;;  %v747_v40 = vsub.f32 1.5, %v746_v61  ;;  %v713_v11 = vsub.f32 %v697_v63, %v705_v37  ;;  %vm759_vm12 = vweird.f32 %v1332_v42  ;;  %v475_v63 = vpop.f32.mrf.mxu0 }
  0xf9   : > { %v1362_v5 = vpop.eup %1020  ;;  %v1365_v9 = vadd.f32 1e-05, %v714_v62  ;;  %v737_v12 = vsub.f32 1.5, %v736_v0  ;;  %v540_v0 = vpop.f32.mrf.mxu1 }
  0xfa   : > { %v1367_v14 = vpop.eup %1022  ;;  %v774_v15 = vmul.f32 %v1362_v5, %v1320_v34  ;;  %v727_v16 = vsub.f32 1.5, %v726_v4  ;;  %v748_v17 = vmul.f32 %v1318_v33, %v747_v40  ;;  %v1379_v20 = vadd.f32 1e-05, %v713_v11 }
  0xfb   : > { %v1373_v18 = vpop.eup %1024  ;;  %v764_v19 = vmul.f32 %v1367_v14, %v1322_v35  ;;  %1026 = vrsqrt.f32 %v1365_v9  ;;  %v738_v26 = vmul.f32 %v1324_v36, %v737_v12  ;;  %vm780_vm13 = vweird.f32 %v1362_v5 }
  0xfc   : > { %v775_v21 = vmul.f32 %v1362_v5, %v774_v15  ;;  %v754_v22 = vmul.f32 %v1373_v18, %v1332_v42  ;;  %v728_v23 = vmul.f32 %v1019_v50, %v727_v16  ;;  %1028 = vrsqrt.f32 %v1379_v20  ;;  %vm781_vm2 = vmor %vm779_vm10, %vm780_vm13 }
  0xfd   : > { %v765_v29 = vmul.f32 %v1367_v14, %v764_v19  ;;  %v752_v13 = vsel %vm751_vm8, %v1318_v33, %v748_v17  ;;  %v742_v32 = vsel %vm741_vm11, %v1324_v36, %v738_v26  ;;  %vm770_vm14 = vweird.f32 %v1367_v14 }
  0xfe   : > { %v755_v30 = vmul.f32 %v1373_v18, %v754_v22  ;;  %v732_v31 = vsel %vm731_vm9, %v1019_v50, %v728_v23  ;;  %v805_v41 = vmul.f32 %v752_v13, %v538_v39  ;;  %v812_v8 = vmul.f32 %v742_v32, %v1279_v48  ;;  %v1429_v48 = vpop.f32.mrf.mxu2  ;;  %vm771_vm1 = vmor %vm769_vm7, %vm770_vm14 }
  0xff   : > { %v811_v37 = vmul.f32 %v732_v31, %v1281_v49  ;;  %v766_v38 = vmul.f32 0.5, %v765_v29  ;;  %v813_v43 = vmul.f32 %v752_v13, %v1277_v47  ;;  %v776_v33 = vmul.f32 0.5, %v775_v21  ;;  %v1426_v49 = vld [vmem:[%s1526_s5] ss:$0 sm:$0xff]  ;;  %v1431_v47 = vpop.f32.mrf.mxu3 }
 0x100   : > { %v756_v44 = vmul.f32 0.5, %v755_v30  ;;  %v803_v50 = vmul.f32 %v732_v31, %v1339_v52  ;;  %v804_v54 = vmul.f32 %v742_v32, %v1345_v58  ;;  %v824_v56 = vmul.f32 %v1402_v7, %v812_v8 }
 0x101   : > { %v1418_v51 = vpop.eup %1026  ;;  %v823_v36 = vmul.f32 %v1402_v7, %v811_v37  ;;  %v767_v53 = vsub.f32 1.5, %v766_v38  ;;  %v825_v52 = vmul.f32 %v1402_v7, %v813_v43  ;;  %v777_v57 = vsub.f32 1.5, %v776_v33 }
 0x102   : > { %v794_v55 = vmul.f32 %v1418_v51, %v1365_v9  ;;  %v1029_v59 = vpop.eup %1028  ;;  %v757_v46 = vsub.f32 1.5, %v756_v44  ;;  %vm760_vm15 = vweird.f32 %v1373_v18  ;;  %v832_v61 = vsub.f32 %v804_v54, %v824_v56 }
 0x103   : > { %v831_v60 = vsub.f32 %v803_v50, %v823_v36  ;;  %v768_v45 = vmul.f32 %v1367_v14, %v767_v53  ;;  %v784_v39 = vmul.f32 %v1029_v59, %v1379_v20  ;;  %v833_v62 = vsub.f32 %v805_v41, %v825_v52  ;;  %vm761_vm3 = vmor %vm759_vm12, %vm760_vm15 }
 0x104   : > { %v795_v58 = vmul.f32 %v1418_v51, %v794_v55  ;;  %v778_v11 = vmul.f32 %v1362_v5, %v777_v57  ;;  %v758_v35 = vmul.f32 %v1373_v18, %v757_v46  ;;  %v544_v12 = vadd.f32 %v1310_v25, %v1308_v24 }
 0x105   : > { %v843_v4 = vadd.f32 %v1426_v49, %v831_v60  ;;  %v772_v40 = vsel %vm771_vm1, %v1367_v14, %v768_v45  ;;  %v785_v16 = vmul.f32 %v1029_v59, %v784_v39  ;;  %v844_v17 = vadd.f32 %v1426_v49, %v832_v61 }
 0x106   : > { %v815_v15 = vmul.f32 %v772_v40, %v1291_v6  ;;  %v845_v34 = vadd.f32 %v1426_v49, %v833_v62  ;;  %v782_v14 = vsel %vm781_vm2, %v1362_v5, %v778_v11  ;;  %v541_v19 = vadd.f32 %v540_v0, %v475_v63 }
 0x107   : > { %851 = vst.msk [vmem:[%s1442_s15] sm:$0xff] %vm424_vm0, %v843_v4  ;;  %v762_v21 = vsel %vm761_vm3, %v1373_v18, %v758_v35  ;;  %v807_v24 = vmul.f32 %v772_v40, %v544_v12  ;;  %v547_v25 = vadd.f32 %v1358_v2, %v1356_v1  ;;  %v816_v42 = vmul.f32 %v782_v14, %v1289_v3  ;;  %v487_v2 = vpop.f32.mrf.mxu2  ;;  %v552_v3 = vpop.f32.mrf.mxu3 }
 0x108   : > { %v827_v6 = vmul.f32 %v1402_v7, %v815_v15  ;;  %852 = vst.msk [vmem:[%s1442_s15 + $0x8] sm:$0xff] %vm424_vm0, %v844_v17  ;;  %v814_v22 = vmul.f32 %v762_v21, %v1297_v10  ;;  %v786_v23 = vmul.f32 0.5, %v785_v16  ;;  %v796_v26 = vmul.f32 0.5, %v795_v58 }
 0x109   : > { %853 = vst.msk [vmem:[%s1442_s15 + $0x10] sm:$0xff] %vm424_vm0, %v845_v34  ;;  %vm800_vm4 = vweird.f32 %v1418_v51  ;;  %v808_v18 = vmul.f32 %v782_v14, %v547_v25  ;;  %v828_v29 = vmul.f32 %v1402_v7, %v816_v42  ;;  %vm790_vm5 = vweird.f32 %v1029_v59 }
 0x10a   : > { %v835_v5 = vsub.f32 %v807_v24, %v827_v6  ;;  %v806_v13 = vmul.f32 %v762_v21, %v541_v19  ;;  %v826_v30 = vmul.f32 %v1402_v7, %v814_v22  ;;  %v787_v1 = vsub.f32 1.5, %v786_v23 }
 0x10b   : > { %v797_v31 = vsub.f32 1.5, %v796_v26  ;;  %v836_v32 = vsub.f32 %v808_v18, %v828_v29  ;;  %vm799_vm6 = vweird.f32 %v1365_v9  ;;  %vm789_vm7 = vweird.f32 %v1379_v20 }
 0x10c   : > { %v847_v10 = vadd.f32 %v1426_v49, %v835_v5  ;;  %v834_v37 = vsub.f32 %v806_v13, %v826_v30  ;;  %v788_v38 = vmul.f32 %v1029_v59, %v787_v1  ;;  %vm801_vm8 = vmor %vm799_vm6, %vm800_vm4  ;;  %v553_v43 = vadd.f32 %v552_v3, %v487_v2 }
 0x10d   : > { %v798_v41 = vmul.f32 %v1418_v51, %v797_v31  ;;  %v848_v8 = vadd.f32 %v1426_v49, %v836_v32  ;;  %vm791_vm9 = vmor %vm789_vm7, %vm790_vm5  ;;  %v550_v20 = vadd.f32 %v1431_v47, %v1429_v48 }
 0x10e   : > { %855 = vst.msk [vmem:[%s1442_s15 + $0x20] sm:$0xff] %vm424_vm0, %v847_v10  ;;  %v846_v33 = vadd.f32 %v1426_v49, %v834_v37  ;;  %v792_v9 = vsel %vm791_vm9, %v1029_v59, %v788_v38 }
 0x10f   : > { %v802_v44 = vsel %vm801_vm8, %v1418_v51, %v798_v41  ;;  %856 = vst.msk [vmem:[%s1442_s15 + $0x28] sm:$0xff] %vm424_vm0, %v848_v8  ;;  %v817_v50 = vmul.f32 %v792_v9, %v1314_v27  ;;  %v809_v53 = vmul.f32 %v792_v9, %v550_v20 }
 0x110   : > { %v818_v36 = vmul.f32 %v802_v44, %v1316_v28  ;;  %854 = vst.msk [vmem:[%s1442_s15 + $0x18] sm:$0xff] %vm424_vm0, %v846_v33  ;;  %v810_v55 = vmul.f32 %v802_v44, %v553_v43 }
 0x111   : > { %v829_v54 = vmul.f32 %v1402_v7, %v817_v50 }
 0x112   : > { %v830_v56 = vmul.f32 %v1402_v7, %v818_v36 }
 0x113   : > { %v837_v52 = vsub.f32 %v809_v53, %v829_v54 }
 0x114   : > { %v838_v57 = vsub.f32 %v810_v55, %v830_v56 }
 0x115   : > { %v849_v51 = vadd.f32 %v1426_v49, %v837_v52 }
 0x116   : > { %v850_v59 = vadd.f32 %v1426_v49, %v838_v57 }
 0x117   : > { %857 = vst.msk [vmem:[%s1442_s15 + $0x30] sm:$0xff] %vm424_vm0, %v849_v51 }
 0x118   : > { %858 = vst.msk [vmem:[%s1442_s15 + $0x38] sm:$0xff] %vm424_vm0, %v850_v59 }
 0x119 PF: > { %p13_p9 = scmp.ge.s32.totalorder %s1106_s25, 4   ;;  %s1529_s21 = smov %s1048_s22 }
 0x11a   : > { %s1530_s22 = smov %s1115_s28  ;;  %s1531_s23 = smov %s1106_s25 }
 0x11b   :  { %15 = sbr.rel (!%p13_p9) target bundleno = 2 (0x2), region = 163 }

</bundles_post_ra>
